<compile_context>
chip_gen: v5e
topology: v5e:2x2
jax: 0.10.0
libtpu: 0.0.40
codegen_flags: <defaults>
</compile_context>

<pallas_src>
import jax
import jax.numpy as jnp
from jax.experimental import pallas as pl
from jax.experimental.pallas import tpu as pltpu


NEG_SLOPE = 0.01   # nn.LeakyReLU() default negative_slope


def _round_up(x, m):
    return ((x + m - 1) // m) * m


def decoder_kernel(z_ref, w1_ref, b1_ref, w2_ref, b2_ref, o_ref):
    # Layer 1: f32 MXU matmul with f32 accumulation, bias + LeakyReLU on VPU.
    h1 = jnp.dot(z_ref[...], w1_ref[...], preferred_element_type=jnp.float32)
    h1 = h1 + b1_ref[...]
    h1 = jnp.maximum(h1, NEG_SLOPE * h1)          # LeakyReLU (0 < slope < 1)
    # Layer 2: f32 MXU matmul, bias add, store (lane extent == out_dim).
    h2 = jnp.dot(h1, w2_ref[...], preferred_element_type=jnp.float32)
    o_ref[...] = (h2 + b2_ref[...]).astype(o_ref.dtype)


def _pick_tile_n(n):
    # >=4 grid steps (2 per TensorCore on v7x, each still pipelined), capped so
    # the double-buffered z/out tiles stay tiny; always a multiple of 8.
    return max(8, min(2048, _round_up(pl.cdiv(max(n, 1), 4), 8)))


def decoder_forward(z, w1, b1, w2, b2, *, tile_n=None):
    """z: (N, in_dim); w1: (in_dim, hidden); b1: (1, hidden);
    w2: (hidden, out_dim); b2: (1, out_dim).  Returns (N, out_dim) f32."""
    n, in_dim = z.shape
    hidden = w1.shape[1]
    out_dim = w2.shape[1]

    if tile_n is None:
        tile_n = _pick_tile_n(n)
    else:
        tile_n = max(8, _round_up(tile_n, 8))      # (8,128) sublane rule

    n_p = _round_up(n, tile_n)
    z_in = z if n_p == n else jnp.pad(z, ((0, n_p - n), (0, 0)))

    grid = (n_p // tile_n,)
    resident = lambda shape: pl.BlockSpec(shape, lambda i: (0,) * len(shape))

    out = pl.pallas_call(
        decoder_kernel,
        out_shape=jax.ShapeDtypeStruct((n_p, out_dim), jnp.float32),
        grid=grid,
        in_specs=[
            pl.BlockSpec((tile_n, in_dim), lambda i: (i, 0)),   # z: tiled over N
            resident((in_dim, hidden)),                         # w1: VMEM-resident
            resident((1, hidden)),                              # b1
            resident((hidden, out_dim)),                        # w2
            resident((1, out_dim)),                             # b2
        ],
        out_specs=pl.BlockSpec((tile_n, out_dim), lambda i: (i, 0)),
        compiler_params=pltpu.CompilerParams(
            dimension_semantics=("parallel",),   # megacore split on v7x
        ),
    )(z_in, w1, b1, w2, b2)

    return out if n_p == n else out[:n]


def init_params(key, in_dim, hidden_dim, out_dim, dtype=jnp.float32):
    """Deterministic init mimicking PyTorch Linear default (uniform +-1/sqrt(fan_in))."""
    k1, k2, k3, k4 = jax.random.split(key, 4)
    lim1 = 1.0 / (in_dim ** 0.5)
    lim2 = 1.0 / (hidden_dim ** 0.5)
    w1 = jax.random.uniform(k1, (in_dim, hidden_dim), dtype, -lim1, lim1)
    b1 = jax.random.uniform(k2, (1, hidden_dim), dtype, -lim1, lim1)
    w2 = jax.random.uniform(k3, (hidden_dim, out_dim), dtype, -lim2, lim2)
    b2 = jax.random.uniform(k4, (1, out_dim), dtype, -lim2, lim2)
    return w1, b1, w2, b2


def decoder_ref(z, w1, b1, w2, b2):
    h1 = z @ w1 + b1
    h1 = jnp.where(h1 > 0, h1, NEG_SLOPE * h1)
    return h1 @ w2 + b2


if __name__ == "__main__":
    in_dim, hidden_dim, out_dim = 32, 35, 16
    n = 100                      # not a multiple of tile_n -> exercises batch padding

    key = jax.random.PRNGKey(0)
    kz, kp = jax.random.split(key)
    z = jax.random.normal(kz, (n, in_dim), jnp.float32)
    w1, b1, w2, b2 = init_params(kp, in_dim, hidden_dim, out_dim)

    out = decoder_forward(z, w1, b1, w2, b2)
    out = jax.block_until_ready(out)

    ref = decoder_ref(z, w1, b1, w2, b2)

    assert out.shape == (n, out_dim)
    assert jnp.allclose(out, ref, atol=2e-2, rtol=2e-2), "mismatch vs reference"

    print("KERNEL_OK")
</pallas_src>

<mosaic_0001>
module attributes {stable_mosaic.version = 11 : i64} {
  func.func @decoder_kernel(%arg0: i32, %arg1: memref<32x32xf32, #tpu.memory_space<vmem>>, %arg2: memref<32x35xf32, #tpu.memory_space<vmem>>, %arg3: memref<1x35xf32, #tpu.memory_space<vmem>>, %arg4: memref<35x16xf32, #tpu.memory_space<vmem>>, %arg5: memref<1x16xf32, #tpu.memory_space<vmem>>, %arg6: memref<32x16xf32, #tpu.memory_space<vmem>>) attributes {dimension_semantics = [#tpu.dimension_semantics<parallel>], iteration_bounds = array<i64: 4>, scalar_prefetch = 0 : i64, scratch_operands = 0 : i64, tpu.core_type = #tpu.core_type<tc>, window_params = [{transform_indices = @transform_0, window_bounds = array<i64: 32, 32>}, {pipeline_mode = #tpu.pipeline_mode<synchronous>, transform_indices = @transform_1, window_bounds = array<i64: 32, 35>}, {pipeline_mode = #tpu.pipeline_mode<synchronous>, transform_indices = @transform_2, window_bounds = array<i64: 1, 35>}, {pipeline_mode = #tpu.pipeline_mode<synchronous>, transform_indices = @transform_3, window_bounds = array<i64: 35, 16>}, {pipeline_mode = #tpu.pipeline_mode<synchronous>, transform_indices = @transform_4, window_bounds = array<i64: 1, 16>}, {transform_indices = @transform_5, window_bounds = array<i64: 32, 16>}]} {
    %c0 = arith.constant 0 : index
    %c0_0 = arith.constant 0 : index
    %0 = vector.load %arg1[%c0, %c0_0] : memref<32x32xf32, #tpu.memory_space<vmem>>, vector<32x32xf32>
    %c0_1 = arith.constant 0 : index
    %c0_2 = arith.constant 0 : index
    %1 = vector.load %arg2[%c0_1, %c0_2] : memref<32x35xf32, #tpu.memory_space<vmem>>, vector<32x35xf32>
    %cst = arith.constant dense<0.000000e+00> : vector<32x35xf32>
    %2 = tpu.matmul %0, %1, %cst {dimension_numbers = #tpu.dot_dimension_numbers<[1], [0], [0], [1], [0, 0, 1, 1], [], []>} : vector<32x32xf32>, vector<32x35xf32>, vector<32x35xf32> -> vector<32x35xf32>
    %c0_3 = arith.constant 0 : index
    %c0_4 = arith.constant 0 : index
    %3 = vector.load %arg3[%c0_3, %c0_4] : memref<1x35xf32, #tpu.memory_space<vmem>>, vector<1x35xf32>
    %4 = vector.broadcast %3 : vector<1x35xf32> to vector<32x35xf32>
    %5 = arith.addf %2, %4 : vector<32x35xf32>
    %cst_5 = arith.constant 0.00999999977 : f32
    %6 = vector.broadcast %cst_5 : f32 to vector<32x35xf32>
    %7 = arith.mulf %6, %5 : vector<32x35xf32>
    %8 = arith.maximumf %5, %7 : vector<32x35xf32>
    %c0_6 = arith.constant 0 : index
    %c0_7 = arith.constant 0 : index
    %9 = vector.load %arg4[%c0_6, %c0_7] : memref<35x16xf32, #tpu.memory_space<vmem>>, vector<35x16xf32>
    %cst_8 = arith.constant dense<0.000000e+00> : vector<32x16xf32>
    %10 = tpu.matmul %8, %9, %cst_8 {dimension_numbers = #tpu.dot_dimension_numbers<[1], [0], [0], [1], [0, 0, 1, 1], [], []>} : vector<32x35xf32>, vector<35x16xf32>, vector<32x16xf32> -> vector<32x16xf32>
    %c0_9 = arith.constant 0 : index
    %c0_10 = arith.constant 0 : index
    %11 = vector.load %arg5[%c0_9, %c0_10] : memref<1x16xf32, #tpu.memory_space<vmem>>, vector<1x16xf32>
    %12 = vector.broadcast %11 : vector<1x16xf32> to vector<32x16xf32>
    %13 = arith.addf %10, %12 : vector<32x16xf32>
    %c0_11 = arith.constant 0 : index
    %c0_12 = arith.constant 0 : index
    %14 = vector.load %arg6[%c0_11, %c0_12] : memref<32x16xf32, #tpu.memory_space<vmem>>, vector<32x16xf32>
    tpu.vector_store %arg6[%c0_11, %c0_12], %13 {strides = array<i32>} : memref<32x16xf32, #tpu.memory_space<vmem>>, vector<32x16xf32>,
    return
  }
  func.func @transform_0(%arg0: i32) -> (i32, i32) {
    %c0_i32 = arith.constant 0 : i32
    %c0_i32_0 = arith.constant 0 : i32
    return %arg0, %c0_i32 : i32, i32
  }
  func.func @transform_1(%arg0: i32) -> (i32, i32) {
    %c0_i32 = arith.constant 0 : i32
    %c0_i32_0 = arith.constant 0 : i32
    %c0_i32_1 = arith.constant 0 : i32
    return %c0_i32, %c0_i32_0 : i32, i32
  }
  func.func @transform_2(%arg0: i32) -> (i32, i32) {
    %c0_i32 = arith.constant 0 : i32
    %c0_i32_0 = arith.constant 0 : i32
    %c0_i32_1 = arith.constant 0 : i32
    return %c0_i32, %c0_i32_0 : i32, i32
  }
  func.func @transform_3(%arg0: i32) -> (i32, i32) {
    %c0_i32 = arith.constant 0 : i32
    %c0_i32_0 = arith.constant 0 : i32
    %c0_i32_1 = arith.constant 0 : i32
    return %c0_i32, %c0_i32_0 : i32, i32
  }
  func.func @transform_4(%arg0: i32) -> (i32, i32) {
    %c0_i32 = arith.constant 0 : i32
    %c0_i32_0 = arith.constant 0 : i32
    %c0_i32_1 = arith.constant 0 : i32
    return %c0_i32, %c0_i32_0 : i32, i32
  }
  func.func @transform_5(%arg0: i32) -> (i32, i32) {
    %c0_i32 = arith.constant 0 : i32
    %c0_i32_0 = arith.constant 0 : i32
    return %arg0, %c0_i32 : i32, i32
  }
}

</mosaic_0001>

<bundles_post_ra>
// kernel: tpu_custom_call.1
= control target key start
LH: loop header
LB: loop body
LE: loop exit
PB: predicated region body
PF: predicated region fallthrough
CT: control target
= control target key end

     0   :  { %s483_s18 = smov 0   ;;  %s544_s0 = inlined_call_operand.vmem [shape: f32[128,32], index: 0, kind: input, shape index: {}]   ;;  %s545_s1 = inlined_call_operand.vmem [shape: f32[32,35], index: 1, kind: input, shape index: {}]   ;;  %s546_s2 = inlined_call_operand.vmem [shape: f32[1,35], index: 2, kind: input, shape index: {}]   ;;  %s547_s3 = inlined_call_operand.vmem [shape: f32[35,16], index: 3, kind: input, shape index: {}]   ;;  %s548_s4 = inlined_call_operand.vmem [shape: f32[1,16], index: 4, kind: input, shape index: {}]   ;;  %s549_s5 = inlined_call_operand.vmem [shape: f32[128,16], index: 5, kind: output, shape index: {}]  }
   0x1 LB: > { %s406_s19 = sadd.s32 4294967295, %s451_s18   ;;  %p410_p0 = scmp.ge.s32.totalorder %s451_s18, 1  ;;  %s451_s18 = sphi %s483_s18, %s15_s18  }
   0x2   : > { %p188_p1 = scmp.lt.s32.totalorder %s451_s18, 5 }
   0x4   : > { %p189_p2 = pnand %p410_p0, %p188_p1 }
   0x5   : > { %s411_s24 = sshll.u32 (!%p189_p2), %s406_s19, 2 }
   0x6   : > { %192 = sbr.rel (%p189_p2) target bundleno = 308 (0x134), region = 40  ;;  %p217_p3 = scmp.lt.s32.totalorder (!%p189_p2), %s411_s24, 15 }
   0xb   : > { %v235_v0 = vld [vmem:[%s545_s1 + $0x18] sm:$0xff]  ;;  %v234_v1 = vld [vmem:[%s545_s1 + $0x10] sm:$0xff]  ;;  %vm312_vm0 = vcmask 1042432   ;;  %v294_v2 = vld [vmem:[%s547_s3 + $0x20] sm:$0x7]  ;;  %s551_s24 = smov (!%p217_p3, %s411_s24), 15 }
   0xc   : > { %265 = vmatpush.msra.mxu0 %v235_v0  ;;  %426 = vmatpush.msra.mxu3 %v235_v0  ;;  %v233_v3 = vld [vmem:[%s545_s1 + $0x8] sm:$0xff]  ;;  %v232_v4 = vld [vmem:[%s545_s1] sm:$0xff]  ;;  %s412_s6 = sshll.u32 %s551_s24, 3  ;;  %vm240_vm1 = vcmask 261120   ;;  %v293_v9 = vld [vmem:[%s547_s3 + $0x18] sm:$0xff]  ;;  %vm299_vm2 = vcmask 285696  }
   0xd   : > { %419 = vmatpush.msk.msra.mxu1 %vm312_vm0, %v294_v2  ;;  %430 = vmatpush.msk.msra.mxu2 %vm312_vm0, %v294_v2  ;;  %s220_s9 = scalar_lea.vmem %s544_s0, %s412_s6  ;;  %v292_v10 = vld [vmem:[%s547_s3 + $0x10] sm:$0xff]  ;;  %v291_v11 = vld [vmem:[%s547_s3 + $0x8] sm:$0xff]  ;;  %v290_v12 = vld [vmem:[%s547_s3] sm:$0xff]  ;;  %s226_s26 = scalar_lea.vmem %s549_s5, %s412_s6  ;;  %vm345_vm3 = vcmask 130048  }
   0xe   : > { %266 = vmatpush.msra.mxu0 %v234_v1  ;;  %427 = vmatpush.msra.mxu3 %v234_v1  ;;  %v228_v5 = vld [vmem:[%s220_s9] sm:$0xff]  ;;  %v229_v6 = vld [vmem:[%s220_s9 + $0x8] sm:$0xff]  ;;  %v230_v7 = vld [vmem:[%s220_s9 + $0x10] sm:$0xff] }
   0xf   : > { %v231_v8 = vld [vmem:[%s220_s9 + $0x18] sm:$0xff]  ;;  %328 = vmatpush.msra.mxu1 %v293_v9  ;;  %431 = vmatpush.msra.mxu2 %v293_v9  ;;  %v443_v13 = vld [vmem:[%s546_s2] ss:$0 sm:$0xff] }
  0x10   : > { %267 = vmatpush.msra.mxu0 %v233_v3  ;;  %428 = vmatpush.msra.mxu3 %v233_v3  ;;  %v444_v30 = vld [vmem:[%s548_s4] ss:$0 sm:$0xff] }
  0x11   : > { %329 = vmatpush.msra.mxu1 %v292_v10  ;;  %432 = vmatpush.msra.mxu2 %v292_v10 }
  0x12   : > { %268 = vmatpush.msra.mxu0 %v232_v4  ;;  %429 = vmatpush.msra.mxu3 %v232_v4 }
  0x13   : > { %415 = vmatmul.msk.f32.vlgmr.msra.gmra.mxu0 %vm240_vm1, %v228_v5  ;;  %416 = vmatmul.msk.f32.vlgmr.msra.gmra.mxu3 %vm240_vm1, %v229_v6 }
  0x14   : > { %330 = vmatpush.msra.mxu1 %v291_v11  ;;  %433 = vmatpush.msra.mxu2 %v291_v11 }
  0x16   : > { %331 = vmatpush.msra.mxu1 %v290_v12  ;;  %434 = vmatpush.msra.mxu2 %v290_v12 }
  0x1b   : > { %417 = vmatmul.msk.f32.gmra.mxu3 %vm240_vm1, %v230_v7 }
  0x23   : > { %418 = vmatmul.msk.f32.gmra.mxu3 %vm240_vm1, %v231_v8 }
  0x90   : > { %v270_v14 = vpop.f32.mrf.mxu0 }
  0x91   : > { %v271_v15 = vadd.f32 %v443_v13, %v270_v14 }
  0x93   : > { %v282_v16 = vmul.f32 0.01, %v271_v15 }
  0x95   : > { %v286_v17 = vmax.f32 %v271_v15, %v282_v16 }
  0x96   : > { %v273_v18 = vpop.f32.mrf.mxu3 }
  0x97   : > { %v274_v19 = vadd.f32 %v443_v13, %v273_v18  ;;  %420 = vmatmul.msk.f32.vlgmr.msra.gmra.mxu1 %vm299_vm2, %v286_v17 }
  0x99   : > { %v283_v20 = vmul.f32 0.01, %v274_v19 }
  0x9b   : > { %v287_v21 = vmax.f32 %v274_v19, %v283_v20 }
  0x9e   : > { %v276_v22 = vpop.f32.mrf.mxu3 }
  0x9f   : > { %v277_v23 = vadd.f32 %v443_v13, %v276_v22  ;;  %421 = vmatmul.msk.f32.gmra.mxu1 %vm299_vm2, %v287_v21 }
  0xa1   : > { %v284_v24 = vmul.f32 0.01, %v277_v23 }
  0xa3   : > { %v288_v25 = vmax.f32 %v277_v23, %v284_v24 }
  0xa5   : > { %422 = vmatmul.msk.f32.vlgmr.msra.gmra.mxu2 %vm299_vm2, %v288_v25 }
  0xa6   : > { %v279_v26 = vpop.f32.mrf.mxu3 }
  0xa7   : > { %v280_v27 = vadd.f32 %v443_v13, %v279_v26 }
  0xa9   : > { %v285_v28 = vmul.f32 0.01, %v280_v27 }
  0xab   : > { %v289_v29 = vmax.f32 %v280_v27, %v285_v28 }
  0xad   : > { %423 = vmatmul.msk.f32.gmra.mxu2 %vm299_vm2, %v289_v29 }
 0x114   : > { %v333_v31 = vpop.f32.mrf.mxu1 }
 0x115   : > { %v334_v32 = vadd.f32 %v444_v30, %v333_v31 }
 0x117   : > { %346 = vst.msk [vmem:[%s226_s26] sm:$0xff] %vm345_vm3, %v334_v32 }
 0x11c   : > { %v336_v33 = vpop.f32.mrf.mxu1 }
 0x11d   : > { %v337_v34 = vadd.f32 %v444_v30, %v336_v33 }
 0x11f   : > { %347 = vst.msk [vmem:[%s226_s26 + $0x8] sm:$0xff] %vm345_vm3, %v337_v34 }
 0x128   : > { %v339_v35 = vpop.f32.mrf.mxu2 }
 0x129   : > { %v340_v36 = vadd.f32 %v444_v30, %v339_v35 }
 0x12b   : > { %348 = vst.msk [vmem:[%s226_s26 + $0x10] sm:$0xff] %vm345_vm3, %v340_v36 }
 0x130   : > { %v342_v37 = vpop.f32.mrf.mxu2 }
 0x131   : > { %v343_v38 = vadd.f32 %v444_v30, %v342_v37 }
 0x133   : > { %349 = vst.msk [vmem:[%s226_s26 + $0x18] sm:$0xff] %vm345_vm3, %v343_v38 }
 0x134 PF: > { %s15_s18 = sadd.s32 1, %s451_s18  }
 0x135   : > { %p12_p4 = scmp.ge.s32.totalorder %s15_s18, 6  }
 0x137   :  { %14 = sbr.rel (!%p12_p4) target bundleno = 1 (0x1), region = 70 }

</bundles_post_ra>
